<compile_context>
chip_gen: v6e
topology: v6e:2x2x1
jax: 0.10.0
libtpu: 0.0.40
codegen_flags: <defaults>
</compile_context>

<pallas_src>
import math

import jax
import jax.numpy as jnp
from jax.experimental import pallas as pl
from jax.experimental.pallas import tpu as pltpu

_LANE = 128


def _sublane_multiple(dtype) -> int:
    itemsize = jnp.dtype(dtype).itemsize
    return {4: 8, 2: 16, 1: 32}.get(itemsize, 8)


def _default_rows_tile() -> int:
    try:
        kind = jax.devices()[0].device_kind.lower()
    except Exception:
        return 4096
    if "v6" in kind or "v7" in kind:
        # 4 MiB f32 block; 16 MiB with in+out double-buffered (<32 MiB scoped
        # default on v6e and v7x; well under v7x's 64 MiB physical VMEM).
        return 8192
    # v5e & older: 2 MiB block, 8 MiB double-buffered (<16 MiB scoped default).
    return 4096


def _super_gaussian_kernel(coef_ref, x_ref, o_ref):
    # coef_ref: (B,) f32 scalar-prefetched into SMEM: per-sample  -b / (2*a*a)
    # x_ref / o_ref: (1, rt, 128) VMEM tiles of the flattened features.
    b = pl.program_id(0)
    c = coef_ref[b]                                  # scalar f32
    x = x_ref[...].astype(jnp.float32)               # (1, rt, 128)
    # TODO(synk): on v7x, if the single EUP exp slot becomes binding at
    # 3.2 TB/s HBM, compute the exp in bf16 when the activation dtype permits.
    o_ref[...] = jnp.exp(c * x * x).astype(o_ref.dtype)


def super_gaussian(x, codes, weight_a, weight_b, agnostic_a, agnostic_b,
                   factor, *, rows_tile=None):
    """Pallas forward of SuperGaussian. x: (B, ...) batch-first; codes: (B, code)."""
    orig_shape = x.shape
    B = orig_shape[0]
    N = int(math.prod(orig_shape[1:]))

    # --- per-sample scalars: tiny linear, done in plain JAX (hoisted) -------
    a = agnostic_a + factor * (codes @ weight_a.T)          # (B, 1)
    bexp = agnostic_b + factor * (codes @ weight_b.T)       # (B, 1)
    coef = (-bexp / (2.0 * a * a)).astype(jnp.float32).reshape(B)   # (B,)

    # --- lane-dense layout: (B, N) -> (B, R, 128), minimal padding ----------
    x2d = x.reshape(B, N)
    Np = ((N + _LANE - 1) // _LANE) * _LANE
    if Np != N:
        # TODO(synk): a fully copy-free ragged-N path needs manual DMA from an
        # ANY-space ref; for <128 pad elements/sample we accept the edge copy.
        x2d = jnp.pad(x2d, ((0, 0), (0, Np - N)))
    R = Np // _LANE
    x3d = x2d.reshape(B, R, _LANE)

    # --- tile-size selection -------------------------------------------------
    sub = _sublane_multiple(x.dtype)
    rt = rows_tile if rows_tile is not None else _default_rows_tile()
    rt = max(sub, (rt // sub) * sub)
    rt = min(rt, ((R + sub - 1) // sub) * sub)
    # Keep >= 4 grid steps when possible so v7x's 2 TensorCores both get work.
    while rt > sub and B * pl.cdiv(R, rt) < 4:
        rt = max(sub, ((rt // 2) // sub) * sub)

    grid = (B, pl.cdiv(R, rt))   # ragged final block along R is fine

    itemsize = jnp.dtype(x.dtype).itemsize
    cost = pl.CostEstimate(
        flops=2 * B * Np,
        transcendentals=B * Np,
        bytes_accessed=2 * B * Np * itemsize,
    )

    out3d = pl.pallas_call(
        _super_gaussian_kernel,
        out_shape=jax.ShapeDtypeStruct((B, R, _LANE), x.dtype),
        grid_spec=pltpu.PrefetchScalarGridSpec(
            num_scalar_prefetch=1,                          # coef -> SMEM
            grid=grid,
            in_specs=[
                pl.BlockSpec((1, rt, _LANE), lambda b, r, coef: (b, r, 0)),
            ],
            out_specs=pl.BlockSpec((1, rt, _LANE), lambda b, r, coef: (b, r, 0)),
        ),
        compiler_params=pltpu.CompilerParams(
            dimension_semantics=("parallel", "parallel")),
        cost_estimate=cost,
    )(coef, x3d)

    out2d = out3d.reshape(B, Np)
    if Np != N:
        out2d = out2d[:, :N]
    return out2d.reshape(orig_shape)


if __name__ == "__main__":
    key = jax.random.PRNGKey(0)
    k_x, k_c, k_wa, k_wb = jax.random.split(key, 4)

    B, C, Hs, Ws = 2, 4, 16, 16
    code = 8
    factor = 0.1

    x = jax.random.normal(k_x, (B, C, Hs, Ws), dtype=jnp.float32)
    codes = jax.random.normal(k_c, (B, code), dtype=jnp.float32)

    # Deterministic parameter init (module __init__ / reset_parameters shapes).
    bound = 1.0 / math.sqrt(code)
    weight_a = jax.random.uniform(k_wa, (1, code), jnp.float32, -bound, bound)
    weight_b = jax.random.uniform(k_wb, (1, code), jnp.float32, -bound, bound)
    agnostic_a = jnp.array([1.0], dtype=jnp.float32)
    agnostic_b = jnp.array([1.0], dtype=jnp.float32)

    out = super_gaussian(x, codes, weight_a, weight_b,
                         agnostic_a, agnostic_b, factor)
    out = jax.block_until_ready(out)

    # Pure-JAX reference (original, unfused form) for sanity.
    a_ref = (agnostic_a + factor * (codes @ weight_a.T))[..., None, None]  # (B,1,1,1)
    b_ref = (agnostic_b + factor * (codes @ weight_b.T))[..., None, None]
    ref = jnp.exp(-x ** 2 / (2.0 * a_ref ** 2)) ** b_ref

    assert out.shape == (B, C, Hs, Ws)
    assert jnp.allclose(out, ref, atol=1e-5, rtol=1e-5), "mismatch vs reference"
    print("KERNEL_OK")
</pallas_src>

<mosaic_0001>
module attributes {stable_mosaic.version = 11 : i64} {
  func.func @_super_gaussian_kernel(%arg0: i32, %arg1: i32, %arg2: memref<2xf32, #tpu.memory_space<smem>>, %arg3: memref<1x8x128xf32, #tpu.memory_space<vmem>>, %arg4: memref<1x8x128xf32, #tpu.memory_space<vmem>>) attributes {dimension_semantics = [#tpu.dimension_semantics<parallel>, #tpu.dimension_semantics<parallel>], iteration_bounds = array<i64: 2, 1>, scalar_prefetch = 1 : i64, scratch_operands = 0 : i64, tpu.core_type = #tpu.core_type<tc>, window_params = [{transform_indices = @transform_0, window_bounds = array<i64: 1, 8, 128>}, {transform_indices = @transform_1, window_bounds = array<i64: 1, 8, 128>}]} {
    %0 = arith.index_cast %arg0 : i32 to index
    %1 = memref.load %arg2[%0] : memref<2xf32, #tpu.memory_space<smem>>
    %c0 = arith.constant 0 : index
    %c0_0 = arith.constant 0 : index
    %c0_1 = arith.constant 0 : index
    %2 = vector.load %arg3[%c0, %c0_0, %c0_1] : memref<1x8x128xf32, #tpu.memory_space<vmem>>, vector<1x8x128xf32>
    %3 = vector.broadcast %1 : f32 to vector<1x8x128xf32>
    %4 = arith.mulf %3, %2 : vector<1x8x128xf32>
    %5 = arith.mulf %4, %2 : vector<1x8x128xf32>
    %6 = math.exp %5 : vector<1x8x128xf32>
    %c0_2 = arith.constant 0 : index
    %c0_3 = arith.constant 0 : index
    %c0_4 = arith.constant 0 : index
    %7 = vector.load %arg4[%c0_2, %c0_3, %c0_4] : memref<1x8x128xf32, #tpu.memory_space<vmem>>, vector<1x8x128xf32>
    tpu.vector_store %arg4[%c0_2, %c0_3, %c0_4], %6 {strides = array<i32>} : memref<1x8x128xf32, #tpu.memory_space<vmem>>, vector<1x8x128xf32>,
    return
  }
  func.func @transform_0(%arg0: i32, %arg1: i32, %arg2: memref<2xf32, #tpu.memory_space<smem>>) -> (i32, i32, i32) {
    %c0_i32 = arith.constant 0 : i32
    %c0_i32_0 = arith.constant 0 : i32
    return %arg0, %arg1, %c0_i32 : i32, i32, i32
  }
  func.func @transform_1(%arg0: i32, %arg1: i32, %arg2: memref<2xf32, #tpu.memory_space<smem>>) -> (i32, i32, i32) {
    %c0_i32 = arith.constant 0 : i32
    %c0_i32_0 = arith.constant 0 : i32
    return %arg0, %arg1, %c0_i32 : i32, i32, i32
  }
}

</mosaic_0001>

<bundles_post_ra>
// kernel: tpu_custom_call.1
= control target key start
LH: loop header
LB: loop body
LE: loop exit
PB: predicated region body
PF: predicated region fallthrough
CT: control target
= control target key end

     0   :  { %s455_s9 = smov [#allocation3]   ;;  %s617_s0 = inlined_call_operand.hbm [shape: f32[2], index: 0, kind: input, shape index: {}]   ;;  %s618_s1 = inlined_call_operand.hbm [shape: f32[2,8,128], index: 1, kind: input, shape index: {}]   ;;  %s619_s2 = inlined_call_operand.hbm [shape: f32[2,8,128], index: 2, kind: output, shape index: {}]  }
   0x1   :  { %8 = dma.hbm_to_smem %s617_s0, 16, %s455_s9, [#allocation2] }
   0x2   :  { %421 = dma.done.wait [#allocation2], 16 }
   0x3   :  { %422 = vsyncadd [#allocation2], 4294967280 }
   0x4   :  { %10 = sfence }
   0x5   :  { %11 = vsyncpa [#allocation5], 0 }
   0x6   :  { %13 = vsyncpa [#allocation5 + $0x1], 0 }
   0x7   :  { %14 = vsyncpa [#allocation6], 0 }
   0x8   :  { %16 = vsyncpa [#allocation6 + $0x1], 0  ;;  %s476_s12 = smov 0   ;;  %s478_s13 = smov 0  }
   0x9   :  { %s480_s14 = smov 0   ;;  %s482_s15 = smov 0  }
   0xa   :  { %s484_s16 = smov 0   ;;  %s486_s17 = smov 0  }
   0xb LB: > { %s257_s0 = sadd.s32 4294967295, %s453_s17   ;;  %s258_s18 = sadd.s32 4294967294, %s453_s17   ;;  %s453_s17 = sphi %s486_s17, %s22_s17   ;;  %s449_s16 = sphi %s484_s16, %s631_s16   ;;  %s445_s15 = sphi %s482_s15, %s630_s15   ;;  %s441_s14 = sphi %s480_s14, %s629_s14   ;;  %s437_s13 = sphi %s478_s13, %s628_s13   ;;  %s433_s12 = sphi %s476_s12, %s627_s12  }
   0xc   : > { %s34_s19 = sadd.s32 1, %s449_s16  ;;  %s43_s20 = sadd.s32 1, %s441_s14 }
   0xd   : > { %p36_p0 = scmp.ge.s32.totalorder %s34_s19, 2  ;;  %p50_p1 = scmp.ne.s32.totalorder %s441_s14, %s437_s13 }
   0xe   : > { %p51_p2 = scmp.eq.s32.totalorder %s453_s17, 0  ;;  %p56_p3 = scmp.ne.s32.totalorder %s437_s13, %s433_s12 }
   0xf   : > { %s633_s19 = smov (%p36_p0, %s34_s19), 0  ;;  %p57_p5 = scmp.eq.s32.totalorder %s257_s0, 0 }
  0x10   : > { %p517_p4 = por %p51_p2, %p50_p1  ;;  %s38_s22 = ssub.s32 %s449_s16, %s633_s19 }
  0x11   : > { %p82_p6 = scmp.eq.s32.totalorder %s257_s0, 1  ;;  %p41_p7 = scmp.eq.s32.totalorder %s38_s22, 0 }
  0x12   : > { %p523_p8 = por %p57_p5, %p56_p3  ;;  %p88_p10 = scmp.eq.s32.totalorder %s258_s18, 1 }
  0x13   : > { %p527_p9 = por %p82_p6, %p50_p1  ;;  %p282_p13 = scmp.lt.s32.totalorder %s453_s17, 2 }
  0x14   : > { %s532_s25 = scalar_select %p41_p7, %s441_s14, %s43_s20  }
  0x15   : > { %p534_p11 = por %p88_p10, %p56_p3  ;;  %s108_s27 = sand.u32 1, %s441_s14  }
  0x16   : > { %s261_s28 = sshll.u32 %s108_s27, 3  ;;  %s262_s29 = sshll.u32 %s449_s16, 7 }
  0x17   : > { %s623_s26 = scalar_select %p534_p11, 1, 0 }
  0x18   : > { %s118_s4 = scalar_lea.hbm %s618_s1, %s262_s29  ;;  %s112_s5 = scalar_lea.vmem [#allocation4], %s261_s28 }
  0x19   : > { %s120_s6 = sshll.u32 %s112_s5, 4  ;;  %p547_p0 = pnand %p282_p13, %p517_p4  ;;  %s121_s6 = int_to_ptr.vmem [resolvable:$true] %s120_s6 }
  0x1a   : > { %p263_p1 = scmp.ge.s32.totalorder %s453_s17, 1  ;;  %p125_p2 = scmp.lt.s32.totalorder %s453_s17, 3 }
  0x1b   : > { %s109_s8 = scalar_lea.sflag [#allocation5], %s108_s27  ;;  %p345_p3 = pneg %p547_p0 }
  0x1c   : > { %s356_s9 = scalar_lea.vmem %s121_s6, 128  ;;  %s456_s10 = smov [#allocation4]  }
  0x1d   : > { %p357_p5 = scmp.ne.s32.totalorder %s121_s6, %s356_s9  ;;  %s361_s11 = sshll.u32 %s456_s10, 4  ;;  %s362_s11 = int_to_ptr.vmem [resolvable:$false] %s361_s11 }
  0x1e   : > { %s363_s0 = scalar_lea.vmem %s362_s11, 256  ;;  %p364_p10 = scmp.lt.s32.totalorder %s121_s6, %s362_s11 }
  0x1f   : > { %p359_p6 = pnand %p357_p5, %p345_p3  ;;  %p365_p12 = scmp.lt.s32.totalorder %s363_s0, %s356_s9 }
  0x21   : > { %p360_p7 = pneg %p359_p6  ;;  %p366_p4 = por %p365_p12, %p364_p10 }
  0x23   : > { %p367_p13 = pnand %p366_p4, %p360_p7 }
  0x25   : > { %370 = shalt.err (!%p367_p13)
}
  0x26   : > { %277 = dma.hbm_to_vmem [thread:$0]  (!%p547_p0), %s118_s4, 128, %s121_s6, %s109_s8  }
  0x27   : > { %p126_p11 = pnand %p263_p1, %p125_p2 }
  0x28   : > { %s562_s18 = sand.u32 (!%p126_p11), 1, %s437_s13  }
  0x29   : > { %129 = sbr.rel (%p126_p11) target bundleno = 87 (0x57), region = 24  ;;  %s264_s20 = sshll.u32 (!%p126_p11), %s562_s18, 3 }
  0x2a   : > { %s132_s21 = scalar_lea.sflag (!%p126_p11), [#allocation5], %s562_s18  ;;  %s135_s22 = scalar_lea.vmem (!%p126_p11), [#allocation4], %s264_s20 }
  0x2e   : > { %424 = dma.done.wait (%p523_p8), %s132_s21, 128  }
  0x2f   : > { %426 = vsyncadd (%p523_p8), %s132_s21, 4294967168  ;;  %s154_s27 = sld [smem:[#allocation3 + %s445_s15]]  ;;  %v155_v0 = vld [vmem:[%s135_s22] sm:$0xff]  ;;  %s153_s28 = scalar_lea.vmem [#allocation7], %s264_s20 }
  0x30   : > { %s177_s29 = sshll.u32 %s153_s28, 4  ;;  %s267_s30 = sshll.u32 %s445_s15, 7  ;;  %s572_s29 = int_to_ptr.vmem [resolvable:$true] %s177_s29 }
  0x31   : > { %s175_s23 = scalar_lea.hbm %s619_s2, %s267_s30  ;;  %s163_s5 = scalar_lea.sflag [#allocation6], %s562_s18 }
  0x32   : > { %s371_s6 = scalar_lea.vmem %s572_s29, 128  ;;  %s457_s7 = smov [#allocation7]  }
  0x33   : > { %p372_p8 = scmp.ne.s32.totalorder %s572_s29, %s371_s6  ;;  %s375_s8 = sshll.u32 %s457_s7, 4  ;;  %s376_s8 = int_to_ptr.vmem [resolvable:$false] %s375_s8 }
  0x34   : > { %s377_s15 = scalar_lea.vmem %s376_s8, 256  ;;  %p378_p0 = scmp.lt.s32.totalorder %s572_s29, %s376_s8 }
  0x35   : > { %v156_v1 = vstv %s154_s27  ;;  %p373_p11 = pnand %p372_p8, %p527_p9  ;;  %p379_p1 = scmp.lt.s32.totalorder %s377_s15, %s371_s6 }
  0x36   : > { %v157_v2 = vmul.f32 %v156_v1, %v155_v0 }
  0x37   : > { %p374_p12 = pneg %p373_p11  ;;  %p380_p2 = por %p379_p1, %p378_p0 }
  0x38   : > { %v158_v3 = vmul.f32 %v157_v2, %v155_v0 }
  0x39   : > { %p381_p3 = pnand %p380_p2, %p374_p12 }
  0x3a   : > { %v159_v4 = vmul.f32 1.442695, %v158_v3 }
  0x3c   : > { %333 = vpow2.f32 %v159_v4 }
  0x49   : > { %v334_v5 = vpop.eup %333 }
  0x4a   : > { %161 = vst [vmem:[%s153_s28] sm:$0xff] %v334_v5 }
  0x4b   : > { %384 = shalt.err (!%p381_p3)
}
  0x4c   : > { %s385_s9 = scalar_lea.hbm %s175_s23, 128  ;;  %s389_s0 = scalar_lea.hbm %s619_s2, 256 }
  0x4d   : > { %p386_p5 = scmp.ne.s32.totalorder %s175_s23, %s385_s9  ;;  %p390_p10 = scmp.lt.s32.totalorder %s175_s23, %s619_s2 }
  0x4e   : > { %p391_p4 = scmp.lt.s32.totalorder %s389_s0, %s385_s9 }
  0x4f   : > { %p387_p6 = pnand %p386_p5, %p527_p9 }
  0x50   : > { %p392_p13 = por %p391_p4, %p390_p10 }
  0x51   : > { %p388_p7 = pneg %p387_p6 }
  0x53   : > { %p393_p8 = pnand %p392_p13, %p388_p7 }
  0x55   : > { %396 = shalt.err (!%p393_p8)
}
  0x56   : > { %272 = dma.vmem_to_hbm [thread:$0]  (%p527_p9), %s572_s29, 128, %s175_s23, %s163_s5  }
  0x57 PF: > { %s189_s21 = sand.u32 1, %s433_s12   ;;  %p625_p11 = scmp.ne.s32.totalorder %s623_s26, 0 }
  0x58   : > { %p626_p12 = scmp.ge.s32.totalorder %s453_s17, 2  ;;  %s190_s22 = scalar_lea.sflag [#allocation6], %s189_s21 }
  0x5a   : > { %p279_p0 = pnand %p626_p12, %p625_p11 }
  0x5c   : > { %p280_p1 = pneg %p279_p0 }
  0x5e   : > { %428 = dma.done.wait (%p280_p1), %s190_s22, 128  }
  0x5f   : > { %430 = vsyncadd (%p280_p1), %s190_s22, 4294967168  ;;  %s22_s17 = sadd.s32 1, %s453_s17   ;;  %s627_s12 = smov %s437_s13 }
  0x60   : > { %p19_p2 = scmp.ge.s32.totalorder %s22_s17, 4   ;;  %s628_s13 = smov %s441_s14 }
  0x61   : > { %s629_s14 = smov %s532_s25  ;;  %s630_s15 = smov %s449_s16 }
  0x62   : > { %s631_s16 = smov %s633_s19  ;;  %21 = sbr.rel (!%p19_p2) target bundleno = 11 (0xb), region = 69 }
  0x67   :  { %195 = vsyncpa [#allocation5], 1 }
  0x68   :  { %197 = vsyncpa [#allocation5 + $0x1], 1 }
  0x69   :  { %198 = vsyncpa [#allocation6], 1 }
  0x6a   :  { %200 = vsyncpa [#allocation6 + $0x1], 1 }

</bundles_post_ra>
